<compile_context>
chip_gen: v6e
topology: v6e:2x2x1
jax: 0.10.0
libtpu: 0.0.40
codegen_flags: <defaults>
</compile_context>

<pallas_src>
import jax
import jax.numpy as jnp
import numpy as np
from jax.experimental import pallas as pl
from jax.experimental.pallas import tpu as pltpu


# ----------------------------- Pallas kernel ------------------------------ #
def _lstm_encoder_kernel(
    gates_pre_ref,   # (T, B, 4H)  xt@Wih^T + bih + bhm   (time-major chunk)
    m_pre_ref,       # (T, B, H)   xt@Wmx^T + bmx + bmh   (time-major chunk)
    wmh_ref,         # (H, H)      Wmh^T
    whm_ref,         # (H, 4H)     Whm^T
    hseq_ref,        # (T, B, H)   hidden_seq chunk (time-major)
    cseq_ref,        # (T, B, H)   c_seq chunk      (time-major)
    ht_sc, ct_sc,    # (B, H)      fp32 carries, persist across grid steps
):
    s = pl.program_id(0)
    T = gates_pre_ref.shape[0]

    @pl.when(s == 0)
    def _():
        ht_sc[...] = jnp.zeros_like(ht_sc)
        ct_sc[...] = jnp.zeros_like(ct_sc)

    # Chunk-invariant loads hoisted out of the time loop.
    wmh = wmh_ref[...]
    whm = whm_ref[...]

    ht = ht_sc[...]
    Ct = ct_sc[...]
    H = ht.shape[-1]

    # Static unroll over the (small) time chunk: all ref indices are static.
    # For large chunks switch to lax.fori_loop(..., unroll=4..8).
    for tt in range(T):
        # mogrifier-style cell (gate order: i, f, g, o)
        mt = m_pre_ref[tt] + jnp.dot(ht, wmh, preferred_element_type=jnp.float32)
        gates = gates_pre_ref[tt] + jnp.dot(mt, whm,
                                            preferred_element_type=jnp.float32)

        it = jax.nn.sigmoid(gates[:, 0 * H:1 * H])
        ft = jax.nn.sigmoid(gates[:, 1 * H:2 * H])
        gt = jnp.tanh(gates[:, 2 * H:3 * H])
        ot = jax.nn.sigmoid(gates[:, 3 * H:4 * H])

        Ct = ft * Ct + it * gt
        ht = ot * jnp.tanh(Ct)

        hseq_ref[tt] = ht
        cseq_ref[tt] = Ct

    ht_sc[...] = ht
    ct_sc[...] = Ct


# ------------------------------- wrapper ---------------------------------- #
def lstm_encoder_forward(x, params, *, time_chunk=None):
    """x: (B, L, C) float32.

    Returns (hidden_seq (B,L,H), c_seq (B,L,H), x_tilde (B,L,C)) — the same
    3-tuple the PyTorch forward() actually returns.
    """
    B, L, C = x.shape
    H = params["wmh"].shape[0]
    x = x.astype(jnp.float32)

    if time_chunk is None:
        # Prefer a few chunks so chunk s+1 input DMA hides under chunk-s compute.
        time_chunk = L
        for cand in (64, 32, 16, 8, 4):
            if L % cand == 0 and L // cand >= 3:
                time_chunk = cand
                break
    T = time_chunk
    assert L % T == 0, "time_chunk must divide L"
    n_chunks = L // T

    # ---- attention, hoisted out of the recurrence entirely (exact) ----
    # score[b,c] = ht.w_ah + Ct.w_ac + sum_l x[b,l,c]*w_ax[l] + b_a ; the ht/Ct
    # terms are constant along c, so softmax over c cancels them exactly.
    score_x = jnp.einsum("blc,l->bc", x, params["w_ax"][:, 0]) + params["b_a"]   # (B, C)
    alpha = jax.nn.softmax(score_x, axis=-1)                                      # (B, C)
    x_tilde = alpha[:, None, :] * x                                               # (B, L, C)

    # ---- per-timestep input projections: one big XLA matmul each, biases folded
    gates_pre = (jnp.einsum("blc,cf->lbf", x, params["wih"].T)
                 + (params["bih"] + params["bhm"]))                               # (L, B, 4H)
    m_pre = (jnp.einsum("blc,cf->lbf", x, params["wmx"].T)
             + (params["bmx"] + params["bmh"]))                                   # (L, B, H)

    wmh_t = params["wmh"].T          # (H, H)
    whm_t = params["whm"].T          # (H, 4H)

    per_chunk = lambda s: (s, 0, 0)
    full2d = lambda s: (0, 0)

    grid_spec = pltpu.PrefetchScalarGridSpec(
        num_scalar_prefetch=0,
        grid=(n_chunks,),
        in_specs=[
            pl.BlockSpec((T, B, 4 * H), per_chunk),   # gates_pre chunk (lane-dense 128)
            pl.BlockSpec((T, B, H), per_chunk),       # m_pre chunk
            pl.BlockSpec((H, H), full2d),             # Wmh^T (constant block)
            pl.BlockSpec((H, 4 * H), full2d),         # Whm^T (constant block)
        ],
        out_specs=[
            pl.BlockSpec((T, B, H), per_chunk),       # hidden_seq (time-major)
            pl.BlockSpec((T, B, H), per_chunk),       # c_seq (time-major)
        ],
        scratch_shapes=[
            pltpu.VMEM((B, H), jnp.float32),          # ht carry
            pltpu.VMEM((B, H), jnp.float32),          # Ct carry
        ],
    )

    h_tm, c_tm = pl.pallas_call(
        _lstm_encoder_kernel,
        out_shape=(
            jax.ShapeDtypeStruct((L, B, H), jnp.float32),
            jax.ShapeDtypeStruct((L, B, H), jnp.float32),
        ),
        grid_spec=grid_spec,
        compiler_params=pltpu.CompilerParams(
            dimension_semantics=("arbitrary",),       # sequential time recurrence
        ),
    )(gates_pre, m_pre, wmh_t, whm_t)

    # time-major -> batch-major (matches the PyTorch .transpose at the end).
    return (jnp.transpose(h_tm, (1, 0, 2)),
            jnp.transpose(c_tm, (1, 0, 2)),
            x_tilde)


# --------------------------- parameter init -------------------------------- #
def _xavier_uniform(key, out_f, in_f):
    bound = float(np.sqrt(6.0 / (in_f + out_f)))
    return jax.random.uniform(key, (out_f, in_f), jnp.float32, -bound, bound)


def init_params(key, L, C, H):
    ks = jax.random.split(key, 5)
    wih = _xavier_uniform(ks[0], 4 * H, C)            # nn.Linear(C, 4H).weight
    wmx = _xavier_uniform(ks[1], H, C)                # nn.Linear(C, H).weight
    wmh = _xavier_uniform(ks[2], H, H)                # nn.Linear(H, H).weight
    whm = _xavier_uniform(ks[3], 4 * H, H)            # nn.Linear(H, 4H).weight
    w_attn = _xavier_uniform(ks[4], 1, 2 * H + L)     # encoder_attn.weight (1, 2H+L)
    return {
        "wih": wih, "bih": jnp.zeros((4 * H,), jnp.float32),
        "wmx": wmx, "bmx": jnp.zeros((H,), jnp.float32),
        "wmh": wmh, "bmh": jnp.zeros((H,), jnp.float32),
        "whm": whm, "bhm": jnp.zeros((4 * H,), jnp.float32),
        # encoder_attn weight split along its input: [ht | Ct | x^T]
        "w_ah": w_attn[:, :H],                        # (1, H)
        "w_ac": w_attn[:, H:2 * H],                   # (1, H)
        "w_ax": w_attn[:, 2 * H:].T,                  # (L, 1)
        "b_a": jnp.zeros((1, 1), jnp.float32),
    }


# ------------------------- pure-JAX reference ------------------------------ #
def reference_forward(x, params):
    """Faithful translation of the PyTorch forward (full attention score)."""
    B, L, C = x.shape
    H = params["wmh"].shape[0]
    ht = jnp.zeros((B, H), jnp.float32)
    Ct = jnp.zeros((B, H), jnp.float32)
    hs, cs, xts = [], [], []
    for t in range(L):
        score = (ht @ params["w_ah"].T + Ct @ params["w_ac"].T
                 + jnp.einsum("blc,l->bc", x, params["w_ax"][:, 0]) + params["b_a"])
        alpha = jax.nn.softmax(score, axis=-1)
        xt = x[:, t, :]
        x_tilde = alpha * xt
        mt = xt @ params["wmx"].T + params["bmx"] + ht @ params["wmh"].T + params["bmh"]
        gates = xt @ params["wih"].T + params["bih"] + mt @ params["whm"].T + params["bhm"]
        i, f, g, o = jnp.split(gates, 4, axis=1)
        Ct = jax.nn.sigmoid(f) * Ct + jax.nn.sigmoid(i) * jnp.tanh(g)
        ht = jax.nn.sigmoid(o) * jnp.tanh(Ct)
        hs.append(ht); cs.append(Ct); xts.append(x_tilde)
    return jnp.stack(hs, 1), jnp.stack(cs, 1), jnp.stack(xts, 1)


if __name__ == "__main__":
    B, L, C, H = 2, 8, 4, 32                           # configs: L=8, C=4, hidden_sz=32
    key = jax.random.PRNGKey(0)
    k_x, k_p = jax.random.split(key)

    x = jax.random.normal(k_x, (B, L, C), jnp.float32)
    params = init_params(k_p, L, C, H)

    # time_chunk=4 -> grid=(2,): exercises the multi-chunk carry + pipelining path.
    h_seq, c_seq, x_til = lstm_encoder_forward(x, params, time_chunk=4)
    jax.block_until_ready((h_seq, c_seq, x_til))

    h_ref, c_ref, xt_ref = reference_forward(x, params)
    np.testing.assert_allclose(np.asarray(h_seq), np.asarray(h_ref), rtol=1e-5, atol=1e-5)
    np.testing.assert_allclose(np.asarray(c_seq), np.asarray(c_ref), rtol=1e-5, atol=1e-5)
    # x_tilde: exact softmax now; only fp-level shift-cancellation vs the reference.
    np.testing.assert_allclose(np.asarray(x_til), np.asarray(xt_ref), rtol=1e-4, atol=1e-5)

    print("KERNEL_OK")
</pallas_src>

<mosaic_0001>
module attributes {stable_mosaic.version = 11 : i64} {
  func.func @_lstm_encoder_kernel(%arg0: i32, %arg1: memref<4x2x128xf32, #tpu.memory_space<vmem>>, %arg2: memref<4x2x32xf32, #tpu.memory_space<vmem>>, %arg3: memref<32x32xf32, #tpu.memory_space<vmem>>, %arg4: memref<32x128xf32, #tpu.memory_space<vmem>>, %arg5: memref<4x2x32xf32, #tpu.memory_space<vmem>>, %arg6: memref<4x2x32xf32, #tpu.memory_space<vmem>>, %arg7: memref<2x32xf32, #tpu.memory_space<vmem>>, %arg8: memref<2x32xf32, #tpu.memory_space<vmem>>) attributes {dimension_semantics = [#tpu.dimension_semantics<arbitrary>], iteration_bounds = array<i64: 2>, scalar_prefetch = 0 : i64, scratch_operands = 2 : i64, tpu.core_type = #tpu.core_type<tc>, window_params = [{transform_indices = @transform_0, window_bounds = array<i64: 4, 2, 128>}, {transform_indices = @transform_1, window_bounds = array<i64: 4, 2, 32>}, {pipeline_mode = #tpu.pipeline_mode<synchronous>, transform_indices = @transform_2, window_bounds = array<i64: 32, 32>}, {pipeline_mode = #tpu.pipeline_mode<synchronous>, transform_indices = @transform_3, window_bounds = array<i64: 32, 128>}, {transform_indices = @transform_4, window_bounds = array<i64: 4, 2, 32>}, {transform_indices = @transform_5, window_bounds = array<i64: 4, 2, 32>}]} {
    %c0_i32 = arith.constant 0 : i32
    %0 = arith.cmpi eq, %arg0, %c0_i32 : i32
    %1 = arith.extui %0 : i1 to i32
    %c0_i32_0 = arith.constant 0 : i32
    %2 = arith.cmpi ne, %1, %c0_i32_0 : i32
    scf.if %2 {
      %cst_76 = arith.constant 0.000000e+00 : f32
      %165 = vector.broadcast %cst_76 : f32 to vector<2x32xf32>
      %c0_77 = arith.constant 0 : index
      %c0_78 = arith.constant 0 : index
      %166 = vector.load %arg7[%c0_77, %c0_78] : memref<2x32xf32, #tpu.memory_space<vmem>>, vector<2x32xf32>
      tpu.vector_store %arg7[%c0_77, %c0_78], %165 {strides = array<i32>} : memref<2x32xf32, #tpu.memory_space<vmem>>, vector<2x32xf32>,
      %cst_79 = arith.constant 0.000000e+00 : f32
      %167 = vector.broadcast %cst_79 : f32 to vector<2x32xf32>
      %c0_80 = arith.constant 0 : index
      %c0_81 = arith.constant 0 : index
      %168 = vector.load %arg8[%c0_80, %c0_81] : memref<2x32xf32, #tpu.memory_space<vmem>>, vector<2x32xf32>
      tpu.vector_store %arg8[%c0_80, %c0_81], %167 {strides = array<i32>} : memref<2x32xf32, #tpu.memory_space<vmem>>, vector<2x32xf32>,
    } else {
    }
    %c0 = arith.constant 0 : index
    %c0_1 = arith.constant 0 : index
    %3 = vector.load %arg3[%c0, %c0_1] : memref<32x32xf32, #tpu.memory_space<vmem>>, vector<32x32xf32>
    %c0_2 = arith.constant 0 : index
    %c0_3 = arith.constant 0 : index
    %4 = vector.load %arg4[%c0_2, %c0_3] : memref<32x128xf32, #tpu.memory_space<vmem>>, vector<32x128xf32>
    %c0_4 = arith.constant 0 : index
    %c0_5 = arith.constant 0 : index
    %5 = vector.load %arg7[%c0_4, %c0_5] : memref<2x32xf32, #tpu.memory_space<vmem>>, vector<2x32xf32>
    %c0_6 = arith.constant 0 : index
    %c0_7 = arith.constant 0 : index
    %6 = vector.load %arg8[%c0_6, %c0_7] : memref<2x32xf32, #tpu.memory_space<vmem>>, vector<2x32xf32>
    %c0_8 = arith.constant 0 : index
    %c0_9 = arith.constant 0 : index
    %c0_10 = arith.constant 0 : index
    %7 = vector.load %arg2[%c0_8, %c0_9, %c0_10] : memref<4x2x32xf32, #tpu.memory_space<vmem>>, vector<1x2x32xf32>
    %8 = vector.shape_cast %7 : vector<1x2x32xf32> to vector<2x32xf32>
    %cst = arith.constant dense<0.000000e+00> : vector<2x32xf32>
    %9 = tpu.matmul %5, %3, %cst {dimension_numbers = #tpu.dot_dimension_numbers<[1], [0], [0], [1], [0, 0, 1, 1], [], []>} : vector<2x32xf32>, vector<32x32xf32>, vector<2x32xf32> -> vector<2x32xf32>
    %10 = arith.addf %8, %9 : vector<2x32xf32>
    %c0_11 = arith.constant 0 : index
    %c0_12 = arith.constant 0 : index
    %c0_13 = arith.constant 0 : index
    %11 = vector.load %arg1[%c0_11, %c0_12, %c0_13] : memref<4x2x128xf32, #tpu.memory_space<vmem>>, vector<1x2x128xf32>
    %12 = vector.shape_cast %11 : vector<1x2x128xf32> to vector<2x128xf32>
    %cst_14 = arith.constant dense<0.000000e+00> : vector<2x128xf32>
    %13 = tpu.matmul %10, %4, %cst_14 {dimension_numbers = #tpu.dot_dimension_numbers<[1], [0], [0], [1], [0, 0, 1, 1], [], []>} : vector<2x32xf32>, vector<32x128xf32>, vector<2x128xf32> -> vector<2x128xf32>
    %14 = arith.addf %12, %13 : vector<2x128xf32>
    %15 = vector.extract_strided_slice %14 {offsets = [0, 0], sizes = [2, 32], strides = [1, 1]} : vector<2x128xf32> to vector<2x32xf32>
    %16 = arith.negf %15 : vector<2x32xf32>
    %17 = math.exp %16 : vector<2x32xf32>
    %cst_15 = arith.constant 1.000000e+00 : f32
    %18 = vector.broadcast %cst_15 : f32 to vector<2x32xf32>
    %19 = arith.addf %18, %17 : vector<2x32xf32>
    %20 = arith.divf %18, %19 : vector<2x32xf32>
    %21 = vector.extract_strided_slice %14 {offsets = [0, 32], sizes = [2, 32], strides = [1, 1]} : vector<2x128xf32> to vector<2x32xf32>
    %22 = arith.negf %21 : vector<2x32xf32>
    %23 = math.exp %22 : vector<2x32xf32>
    %cst_16 = arith.constant 1.000000e+00 : f32
    %24 = vector.broadcast %cst_16 : f32 to vector<2x32xf32>
    %25 = arith.addf %24, %23 : vector<2x32xf32>
    %26 = arith.divf %24, %25 : vector<2x32xf32>
    %27 = vector.extract_strided_slice %14 {offsets = [0, 64], sizes = [2, 32], strides = [1, 1]} : vector<2x128xf32> to vector<2x32xf32>
    %28 = math.tanh %27 : vector<2x32xf32>
    %29 = vector.extract_strided_slice %14 {offsets = [0, 96], sizes = [2, 32], strides = [1, 1]} : vector<2x128xf32> to vector<2x32xf32>
    %30 = arith.negf %29 : vector<2x32xf32>
    %31 = math.exp %30 : vector<2x32xf32>
    %cst_17 = arith.constant 1.000000e+00 : f32
    %32 = vector.broadcast %cst_17 : f32 to vector<2x32xf32>
    %33 = arith.addf %32, %31 : vector<2x32xf32>
    %34 = arith.divf %32, %33 : vector<2x32xf32>
    %35 = arith.mulf %26, %6 : vector<2x32xf32>
    %36 = arith.mulf %20, %28 : vector<2x32xf32>
    %37 = arith.addf %35, %36 : vector<2x32xf32>
    %38 = math.tanh %37 : vector<2x32xf32>
    %39 = arith.mulf %34, %38 : vector<2x32xf32>
    %c0_18 = arith.constant 0 : index
    %c0_19 = arith.constant 0 : index
    %c0_20 = arith.constant 0 : index
    %40 = vector.load %arg5[%c0_18, %c0_19, %c0_20] : memref<4x2x32xf32, #tpu.memory_space<vmem>>, vector<1x2x32xf32>
    %41 = vector.shape_cast %40 : vector<1x2x32xf32> to vector<2x32xf32>
    %42 = vector.shape_cast %39 : vector<2x32xf32> to vector<1x2x32xf32>
    tpu.vector_store %arg5[%c0_18, %c0_19, %c0_20], %42 {strides = array<i32>} : memref<4x2x32xf32, #tpu.memory_space<vmem>>, vector<1x2x32xf32>,
    %c0_21 = arith.constant 0 : index
    %c0_22 = arith.constant 0 : index
    %c0_23 = arith.constant 0 : index
    %43 = vector.load %arg6[%c0_21, %c0_22, %c0_23] : memref<4x2x32xf32, #tpu.memory_space<vmem>>, vector<1x2x32xf32>
    %44 = vector.shape_cast %43 : vector<1x2x32xf32> to vector<2x32xf32>
    %45 = vector.shape_cast %37 : vector<2x32xf32> to vector<1x2x32xf32>
    tpu.vector_store %arg6[%c0_21, %c0_22, %c0_23], %45 {strides = array<i32>} : memref<4x2x32xf32, #tpu.memory_space<vmem>>, vector<1x2x32xf32>,
    %c1 = arith.constant 1 : index
    %c0_24 = arith.constant 0 : index
    %c0_25 = arith.constant 0 : index
    %46 = vector.load %arg2[%c1, %c0_24, %c0_25] : memref<4x2x32xf32, #tpu.memory_space<vmem>>, vector<1x2x32xf32>
    %47 = vector.shape_cast %46 : vector<1x2x32xf32> to vector<2x32xf32>
    %cst_26 = arith.constant dense<0.000000e+00> : vector<2x32xf32>
    %48 = tpu.matmul %39, %3, %cst_26 {dimension_numbers = #tpu.dot_dimension_numbers<[1], [0], [0], [1], [0, 0, 1, 1], [], []>} : vector<2x32xf32>, vector<32x32xf32>, vector<2x32xf32> -> vector<2x32xf32>
    %49 = arith.addf %47, %48 : vector<2x32xf32>
    %c1_27 = arith.constant 1 : index
    %c0_28 = arith.constant 0 : index
    %c0_29 = arith.constant 0 : index
    %50 = vector.load %arg1[%c1_27, %c0_28, %c0_29] : memref<4x2x128xf32, #tpu.memory_space<vmem>>, vector<1x2x128xf32>
    %51 = vector.shape_cast %50 : vector<1x2x128xf32> to vector<2x128xf32>
    %cst_30 = arith.constant dense<0.000000e+00> : vector<2x128xf32>
    %52 = tpu.matmul %49, %4, %cst_30 {dimension_numbers = #tpu.dot_dimension_numbers<[1], [0], [0], [1], [0, 0, 1, 1], [], []>} : vector<2x32xf32>, vector<32x128xf32>, vector<2x128xf32> -> vector<2x128xf32>
    %53 = arith.addf %51, %52 : vector<2x128xf32>
    %54 = vector.extract_strided_slice %53 {offsets = [0, 0], sizes = [2, 32], strides = [1, 1]} : vector<2x128xf32> to vector<2x32xf32>
    %55 = arith.negf %54 : vector<2x32xf32>
    %56 = math.exp %55 : vector<2x32xf32>
    %cst_31 = arith.constant 1.000000e+00 : f32
    %57 = vector.broadcast %cst_31 : f32 to vector<2x32xf32>
    %58 = arith.addf %57, %56 : vector<2x32xf32>
    %59 = arith.divf %57, %58 : vector<2x32xf32>
    %60 = vector.extract_strided_slice %53 {offsets = [0, 32], sizes = [2, 32], strides = [1, 1]} : vector<2x128xf32> to vector<2x32xf32>
    %61 = arith.negf %60 : vector<2x32xf32>
    %62 = math.exp %61 : vector<2x32xf32>
    %cst_32 = arith.constant 1.000000e+00 : f32
    %63 = vector.broadcast %cst_32 : f32 to vector<2x32xf32>
    %64 = arith.addf %63, %62 : vector<2x32xf32>
    %65 = arith.divf %63, %64 : vector<2x32xf32>
    %66 = vector.extract_strided_slice %53 {offsets = [0, 64], sizes = [2, 32], strides = [1, 1]} : vector<2x128xf32> to vector<2x32xf32>
    %67 = math.tanh %66 : vector<2x32xf32>
    %68 = vector.extract_strided_slice %53 {offsets = [0, 96], sizes = [2, 32], strides = [1, 1]} : vector<2x128xf32> to vector<2x32xf32>
    %69 = arith.negf %68 : vector<2x32xf32>
    %70 = math.exp %69 : vector<2x32xf32>
    %cst_33 = arith.constant 1.000000e+00 : f32
    %71 = vector.broadcast %cst_33 : f32 to vector<2x32xf32>
    %72 = arith.addf %71, %70 : vector<2x32xf32>
    %73 = arith.divf %71, %72 : vector<2x32xf32>
    %74 = arith.mulf %65, %37 : vector<2x32xf32>
    %75 = arith.mulf %59, %67 : vector<2x32xf32>
    %76 = arith.addf %74, %75 : vector<2x32xf32>
    %77 = math.tanh %76 : vector<2x32xf32>
    %78 = arith.mulf %73, %77 : vector<2x32xf32>
    %c1_34 = arith.constant 1 : index
    %c0_35 = arith.constant 0 : index
    %c0_36 = arith.constant 0 : index
    %79 = vector.load %arg5[%c1_34, %c0_35, %c0_36] : memref<4x2x32xf32, #tpu.memory_space<vmem>>, vector<1x2x32xf32>
    %80 = vector.shape_cast %79 : vector<1x2x32xf32> to vector<2x32xf32>
    %81 = vector.shape_cast %78 : vector<2x32xf32> to vector<1x2x32xf32>
    tpu.vector_store %arg5[%c1_34, %c0_35, %c0_36], %81 {strides = array<i32>} : memref<4x2x32xf32, #tpu.memory_space<vmem>>, vector<1x2x32xf32>,
    %c1_37 = arith.constant 1 : index
    %c0_38 = arith.constant 0 : index
    %c0_39 = arith.constant 0 : index
    %82 = vector.load %arg6[%c1_37, %c0_38, %c0_39] : memref<4x2x32xf32, #tpu.memory_space<vmem>>, vector<1x2x32xf32>
    %83 = vector.shape_cast %82 : vector<1x2x32xf32> to vector<2x32xf32>
    %84 = vector.shape_cast %76 : vector<2x32xf32> to vector<1x2x32xf32>
    tpu.vector_store %arg6[%c1_37, %c0_38, %c0_39], %84 {strides = array<i32>} : memref<4x2x32xf32, #tpu.memory_space<vmem>>, vector<1x2x32xf32>,
    %c2 = arith.constant 2 : index
    %c0_40 = arith.constant 0 : index
    %c0_41 = arith.constant 0 : index
    %85 = vector.load %arg2[%c2, %c0_40, %c0_41] : memref<4x2x32xf32, #tpu.memory_space<vmem>>, vector<1x2x32xf32>
    %86 = vector.shape_cast %85 : vector<1x2x32xf32> to vector<2x32xf32>
    %cst_42 = arith.constant dense<0.000000e+00> : vector<2x32xf32>
    %87 = tpu.matmul %78, %3, %cst_42 {dimension_numbers = #tpu.dot_dimension_numbers<[1], [0], [0], [1], [0, 0, 1, 1], [], []>} : vector<2x32xf32>, vector<32x32xf32>, vector<2x32xf32> -> vector<2x32xf32>
    %88 = arith.addf %86, %87 : vector<2x32xf32>
    %c2_43 = arith.constant 2 : index
    %c0_44 = arith.constant 0 : index
    %c0_45 = arith.constant 0 : index
    %89 = vector.load %arg1[%c2_43, %c0_44, %c0_45] : memref<4x2x128xf32, #tpu.memory_space<vmem>>, vector<1x2x128xf32>
    %90 = vector.shape_cast %89 : vector<1x2x128xf32> to vector<2x128xf32>
    %cst_46 = arith.constant dense<0.000000e+00> : vector<2x128xf32>
    %91 = tpu.matmul %88, %4, %cst_46 {dimension_numbers = #tpu.dot_dimension_numbers<[1], [0], [0], [1], [0, 0, 1, 1], [], []>} : vector<2x32xf32>, vector<32x128xf32>, vector<2x128xf32> -> vector<2x128xf32>
    %92 = arith.addf %90, %91 : vector<2x128xf32>
    %93 = vector.extract_strided_slice %92 {offsets = [0, 0], sizes = [2, 32], strides = [1, 1]} : vector<2x128xf32> to vector<2x32xf32>
    %94 = arith.negf %93 : vector<2x32xf32>
    %95 = math.exp %94 : vector<2x32xf32>
    %cst_47 = arith.constant 1.000000e+00 : f32
    %96 = vector.broadcast %cst_47 : f32 to vector<2x32xf32>
    %97 = arith.addf %96, %95 : vector<2x32xf32>
    %98 = arith.divf %96, %97 : vector<2x32xf32>
    %99 = vector.extract_strided_slice %92 {offsets = [0, 32], sizes = [2, 32], strides = [1, 1]} : vector<2x128xf32> to vector<2x32xf32>
    %100 = arith.negf %99 : vector<2x32xf32>
    %101 = math.exp %100 : vector<2x32xf32>
    %cst_48 = arith.constant 1.000000e+00 : f32
    %102 = vector.broadcast %cst_48 : f32 to vector<2x32xf32>
    %103 = arith.addf %102, %101 : vector<2x32xf32>
    %104 = arith.divf %102, %103 : vector<2x32xf32>
    %105 = vector.extract_strided_slice %92 {offsets = [0, 64], sizes = [2, 32], strides = [1, 1]} : vector<2x128xf32> to vector<2x32xf32>
    %106 = math.tanh %105 : vector<2x32xf32>
    %107 = vector.extract_strided_slice %92 {offsets = [0, 96], sizes = [2, 32], strides = [1, 1]} : vector<2x128xf32> to vector<2x32xf32>
    %108 = arith.negf %107 : vector<2x32xf32>
    %109 = math.exp %108 : vector<2x32xf32>
    %cst_49 = arith.constant 1.000000e+00 : f32
    %110 = vector.broadcast %cst_49 : f32 to vector<2x32xf32>
    %111 = arith.addf %110, %109 : vector<2x32xf32>
    %112 = arith.divf %110, %111 : vector<2x32xf32>
    %113 = arith.mulf %104, %76 : vector<2x32xf32>
    %114 = arith.mulf %98, %106 : vector<2x32xf32>
    %115 = arith.addf %113, %114 : vector<2x32xf32>
    %116 = math.tanh %115 : vector<2x32xf32>
    %117 = arith.mulf %112, %116 : vector<2x32xf32>
    %c2_50 = arith.constant 2 : index
    %c0_51 = arith.constant 0 : index
    %c0_52 = arith.constant 0 : index
    %118 = vector.load %arg5[%c2_50, %c0_51, %c0_52] : memref<4x2x32xf32, #tpu.memory_space<vmem>>, vector<1x2x32xf32>
    %119 = vector.shape_cast %118 : vector<1x2x32xf32> to vector<2x32xf32>
    %120 = vector.shape_cast %117 : vector<2x32xf32> to vector<1x2x32xf32>
    tpu.vector_store %arg5[%c2_50, %c0_51, %c0_52], %120 {strides = array<i32>} : memref<4x2x32xf32, #tpu.memory_space<vmem>>, vector<1x2x32xf32>,
    %c2_53 = arith.constant 2 : index
    %c0_54 = arith.constant 0 : index
    %c0_55 = arith.constant 0 : index
    %121 = vector.load %arg6[%c2_53, %c0_54, %c0_55] : memref<4x2x32xf32, #tpu.memory_space<vmem>>, vector<1x2x32xf32>
    %122 = vector.shape_cast %121 : vector<1x2x32xf32> to vector<2x32xf32>
    %123 = vector.shape_cast %115 : vector<2x32xf32> to vector<1x2x32xf32>
    tpu.vector_store %arg6[%c2_53, %c0_54, %c0_55], %123 {strides = array<i32>} : memref<4x2x32xf32, #tpu.memory_space<vmem>>, vector<1x2x32xf32>,
    %c3 = arith.constant 3 : index
    %c0_56 = arith.constant 0 : index
    %c0_57 = arith.constant 0 : index
    %124 = vector.load %arg2[%c3, %c0_56, %c0_57] : memref<4x2x32xf32, #tpu.memory_space<vmem>>, vector<1x2x32xf32>
    %125 = vector.shape_cast %124 : vector<1x2x32xf32> to vector<2x32xf32>
    %cst_58 = arith.constant dense<0.000000e+00> : vector<2x32xf32>
    %126 = tpu.matmul %117, %3, %cst_58 {dimension_numbers = #tpu.dot_dimension_numbers<[1], [0], [0], [1], [0, 0, 1, 1], [], []>} : vector<2x32xf32>, vector<32x32xf32>, vector<2x32xf32> -> vector<2x32xf32>
    %127 = arith.addf %125, %126 : vector<2x32xf32>
    %c3_59 = arith.constant 3 : index
    %c0_60 = arith.constant 0 : index
    %c0_61 = arith.constant 0 : index
    %128 = vector.load %arg1[%c3_59, %c0_60, %c0_61] : memref<4x2x128xf32, #tpu.memory_space<vmem>>, vector<1x2x128xf32>
    %129 = vector.shape_cast %128 : vector<1x2x128xf32> to vector<2x128xf32>
    %cst_62 = arith.constant dense<0.000000e+00> : vector<2x128xf32>
    %130 = tpu.matmul %127, %4, %cst_62 {dimension_numbers = #tpu.dot_dimension_numbers<[1], [0], [0], [1], [0, 0, 1, 1], [], []>} : vector<2x32xf32>, vector<32x128xf32>, vector<2x128xf32> -> vector<2x128xf32>
    %131 = arith.addf %129, %130 : vector<2x128xf32>
    %132 = vector.extract_strided_slice %131 {offsets = [0, 0], sizes = [2, 32], strides = [1, 1]} : vector<2x128xf32> to vector<2x32xf32>
    %133 = arith.negf %132 : vector<2x32xf32>
    %134 = math.exp %133 : vector<2x32xf32>
    %cst_63 = arith.constant 1.000000e+00 : f32
    %135 = vector.broadcast %cst_63 : f32 to vector<2x32xf32>
    %136 = arith.addf %135, %134 : vector<2x32xf32>
    %137 = arith.divf %135, %136 : vector<2x32xf32>
    %138 = vector.extract_strided_slice %131 {offsets = [0, 32], sizes = [2, 32], strides = [1, 1]} : vector<2x128xf32> to vector<2x32xf32>
    %139 = arith.negf %138 : vector<2x32xf32>
    %140 = math.exp %139 : vector<2x32xf32>
    %cst_64 = arith.constant 1.000000e+00 : f32
    %141 = vector.broadcast %cst_64 : f32 to vector<2x32xf32>
    %142 = arith.addf %141, %140 : vector<2x32xf32>
    %143 = arith.divf %141, %142 : vector<2x32xf32>
    %144 = vector.extract_strided_slice %131 {offsets = [0, 64], sizes = [2, 32], strides = [1, 1]} : vector<2x128xf32> to vector<2x32xf32>
    %145 = math.tanh %144 : vector<2x32xf32>
    %146 = vector.extract_strided_slice %131 {offsets = [0, 96], sizes = [2, 32], strides = [1, 1]} : vector<2x128xf32> to vector<2x32xf32>
    %147 = arith.negf %146 : vector<2x32xf32>
    %148 = math.exp %147 : vector<2x32xf32>
    %cst_65 = arith.constant 1.000000e+00 : f32
    %149 = vector.broadcast %cst_65 : f32 to vector<2x32xf32>
    %150 = arith.addf %149, %148 : vector<2x32xf32>
    %151 = arith.divf %149, %150 : vector<2x32xf32>
    %152 = arith.mulf %143, %115 : vector<2x32xf32>
    %153 = arith.mulf %137, %145 : vector<2x32xf32>
    %154 = arith.addf %152, %153 : vector<2x32xf32>
    %155 = math.tanh %154 : vector<2x32xf32>
    %156 = arith.mulf %151, %155 : vector<2x32xf32>
    %c3_66 = arith.constant 3 : index
    %c0_67 = arith.constant 0 : index
    %c0_68 = arith.constant 0 : index
    %157 = vector.load %arg5[%c3_66, %c0_67, %c0_68] : memref<4x2x32xf32, #tpu.memory_space<vmem>>, vector<1x2x32xf32>
    %158 = vector.shape_cast %157 : vector<1x2x32xf32> to vector<2x32xf32>
    %159 = vector.shape_cast %156 : vector<2x32xf32> to vector<1x2x32xf32>
    tpu.vector_store %arg5[%c3_66, %c0_67, %c0_68], %159 {strides = array<i32>} : memref<4x2x32xf32, #tpu.memory_space<vmem>>, vector<1x2x32xf32>,
    %c3_69 = arith.constant 3 : index
    %c0_70 = arith.constant 0 : index
    %c0_71 = arith.constant 0 : index
    %160 = vector.load %arg6[%c3_69, %c0_70, %c0_71] : memref<4x2x32xf32, #tpu.memory_space<vmem>>, vector<1x2x32xf32>
    %161 = vector.shape_cast %160 : vector<1x2x32xf32> to vector<2x32xf32>
    %162 = vector.shape_cast %154 : vector<2x32xf32> to vector<1x2x32xf32>
    tpu.vector_store %arg6[%c3_69, %c0_70, %c0_71], %162 {strides = array<i32>} : memref<4x2x32xf32, #tpu.memory_space<vmem>>, vector<1x2x32xf32>,
    %c0_72 = arith.constant 0 : index
    %c0_73 = arith.constant 0 : index
    %163 = vector.load %arg7[%c0_72, %c0_73] : memref<2x32xf32, #tpu.memory_space<vmem>>, vector<2x32xf32>
    tpu.vector_store %arg7[%c0_72, %c0_73], %156 {strides = array<i32>} : memref<2x32xf32, #tpu.memory_space<vmem>>, vector<2x32xf32>,
    %c0_74 = arith.constant 0 : index
    %c0_75 = arith.constant 0 : index
    %164 = vector.load %arg8[%c0_74, %c0_75] : memref<2x32xf32, #tpu.memory_space<vmem>>, vector<2x32xf32>
    tpu.vector_store %arg8[%c0_74, %c0_75], %154 {strides = array<i32>} : memref<2x32xf32, #tpu.memory_space<vmem>>, vector<2x32xf32>,
    return
  }
  func.func @transform_0(%arg0: i32) -> (i32, i32, i32) {
    %c0_i32 = arith.constant 0 : i32
    %c0_i32_0 = arith.constant 0 : i32
    %c0_i32_1 = arith.constant 0 : i32
    return %arg0, %c0_i32, %c0_i32_0 : i32, i32, i32
  }
  func.func @transform_1(%arg0: i32) -> (i32, i32, i32) {
    %c0_i32 = arith.constant 0 : i32
    %c0_i32_0 = arith.constant 0 : i32
    %c0_i32_1 = arith.constant 0 : i32
    return %arg0, %c0_i32, %c0_i32_0 : i32, i32, i32
  }
  func.func @transform_2(%arg0: i32) -> (i32, i32) {
    %c0_i32 = arith.constant 0 : i32
    %c0_i32_0 = arith.constant 0 : i32
    %c0_i32_1 = arith.constant 0 : i32
    return %c0_i32, %c0_i32_0 : i32, i32
  }
  func.func @transform_3(%arg0: i32) -> (i32, i32) {
    %c0_i32 = arith.constant 0 : i32
    %c0_i32_0 = arith.constant 0 : i32
    %c0_i32_1 = arith.constant 0 : i32
    return %c0_i32, %c0_i32_0 : i32, i32
  }
  func.func @transform_4(%arg0: i32) -> (i32, i32, i32) {
    %c0_i32 = arith.constant 0 : i32
    %c0_i32_0 = arith.constant 0 : i32
    %c0_i32_1 = arith.constant 0 : i32
    return %arg0, %c0_i32, %c0_i32_0 : i32, i32, i32
  }
  func.func @transform_5(%arg0: i32) -> (i32, i32, i32) {
    %c0_i32 = arith.constant 0 : i32
    %c0_i32_0 = arith.constant 0 : i32
    %c0_i32_1 = arith.constant 0 : i32
    return %arg0, %c0_i32, %c0_i32_0 : i32, i32, i32
  }
}

</mosaic_0001>

<bundles_post_ra>
// kernel: tpu_custom_call.1
= control target key start
LH: loop header
LB: loop body
LE: loop exit
PB: predicated region body
PF: predicated region fallthrough
CT: control target
= control target key end

     0   :  { %s2300_s0 = inlined_call_operand.hbm [shape: f32[8,2,128], index: 0, kind: input, shape index: {}]   ;;  %s2301_s1 = inlined_call_operand.hbm [shape: f32[8,2,32], index: 1, kind: input, shape index: {}]   ;;  %s2302_s2 = inlined_call_operand.hbm [shape: f32[32,32], index: 2, kind: input, shape index: {}]   ;;  %s2303_s3 = inlined_call_operand.hbm [shape: f32[32,128], index: 3, kind: input, shape index: {}]   ;;  %s2304_s4 = inlined_call_operand.hbm [shape: f32[8,2,32], index: 4, kind: output, shape index: {0}]   ;;  %s2305_s5 = inlined_call_operand.hbm [shape: f32[8,2,32], index: 5, kind: output, shape index: {1}]  }
   0x1   :  { %2309 = sst [smem:[#allocation21_spill]] %s2300_s0 }
   0x2   :  { %2310 = sst [smem:[#allocation22_spill]] %s2302_s2 }
   0x3   :  { %11 = vsyncpa [#allocation5], 0 }
   0x4   :  { %13 = vsyncpa [#allocation5 + $0x1], 0 }
   0x5   :  { %14 = vsyncpa [#allocation8], 0 }
   0x6   :  { %16 = vsyncpa [#allocation8 + $0x1], 0 }
   0x7   :  { %17 = vsyncpa [#allocation11], 0 }
   0x8   :  { %18 = vsyncpa [#allocation6], 0 }
   0x9   :  { %20 = vsyncpa [#allocation6 + $0x1], 0 }
   0xa   :  { %21 = vsyncpa [#allocation14], 0 }
   0xb   :  { %23 = vsyncpa [#allocation14 + $0x1], 0  ;;  %s1845_s18 = smov 0   ;;  %s1847_s19 = smov 0  }
   0xc   :  { %s1849_s20 = smov 0   ;;  %s1851_s21 = smov 0  }
   0xd LB: > { %s1866_s22 = sadd.s32 4294967295, %s1796_s21   ;;  %s1279_s23 = sadd.s32 4294967294, %s1796_s21   ;;  %s1796_s21 = sphi %s1851_s21, %s2332_s21   ;;  %s1792_s20 = sphi %s1849_s20, %s2331_s20   ;;  %s1788_s19 = sphi %s1847_s19, %s2330_s19   ;;  %s1784_s18 = sphi %s1845_s18, %s2329_s18  }
   0xe   : > { %p49_p0 = scmp.ne.s32.totalorder %s1788_s19, %s1784_s18  ;;  %p2306_p1 = scmp.eq.s32.totalorder %s1866_s22, 0 }
   0xf   : > { %p147_p3 = scmp.eq.s32.totalorder %s1279_s23, 1  ;;  %p1280_p5 = scmp.ge.s32.totalorder %s1796_s21, 1 }
  0x10   : > { %p1875_p4 = por %p2306_p1, %p49_p0  ;;  %p180_p7 = scmp.lt.s32.totalorder %s1796_s21, 3 }
  0x11   : > { %p1880_p6 = por %p147_p3, %p49_p0  ;;  %s1798_s27 = smov [#allocation9]  }
  0x12   : > { %s2311_s24 = scalar_select %p1875_p4, 1, 0 }
  0x13   : > { %s2312_s25 = scalar_select %p1880_p6, 1, 0 }
  0x14   : > { %p1886_p9 = pnand %p1280_p5, %p180_p7  ;;  %s192_s28 = sshll.u32 %s1798_s27, 4  ;;  %s193_s28 = int_to_ptr.vmem [resolvable:$true] %s192_s28 }
  0x15   : > { %s1799_s30 = smov [#allocation10]   ;;  %s1593_s7 = scalar_lea.vmem %s193_s28, 512 }
  0x16   : > { %p1478_p10 = pneg %p1886_p9  ;;  %s205_s6 = sshll.u32 %s1799_s30, 4  ;;  %s206_s6 = int_to_ptr.vmem [resolvable:$true] %s205_s6 }
  0x17   : > { %p1594_p0 = scmp.ne.s32.totalorder %s193_s28, %s1593_s7  ;;  %p1601_p7 = scmp.lt.s32.totalorder %s193_s28, %s193_s28 }
  0x18   : > { %p1895_p12 = pnand %p1478_p10, %p2306_p1  ;;  %p1602_p11 = scmp.lt.s32.totalorder %s1593_s7, %s1593_s7 }
  0x1a   : > { %p1584_p13 = pneg %p1895_p12  ;;  %p1603_p8 = por %p1602_p11, %p1601_p7 }
  0x1c   : > { %p1596_p3 = pnand %p1594_p0, %p1584_p13 }
  0x1e   : > { %p1597_p5 = pneg %p1596_p3 }
  0x20   : > { %p1604_p10 = pnand %p1603_p8, %p1597_p5 }
  0x22   : > { %1607 = shalt.err (!%p1604_p10)
}
  0x23   : > { %s1800_s8 = smov 128   ;;  %s1801_s9 = smov 8  }
  0x24   : > { %s2315_s2 = sld [smem:[#allocation22_spill]]  ;;  %s1619_s12 = scalar_lea.vmem %s206_s6, 512 }
  0x25   : > { %p1620_p1 = scmp.ne.s32.totalorder %s206_s6, %s1619_s12  ;;  %p1627_p2 = scmp.lt.s32.totalorder %s206_s6, %s206_s6 }
  0x26   : > { %p1628_p6 = scmp.lt.s32.totalorder %s1619_s12, %s1619_s12 }
  0x27   : > { %p1622_p0 = pnand %p1620_p1, %p1584_p13 }
  0x28   : > { %p1629_p11 = por %p1628_p6, %p1627_p2 }
  0x29   : > { %p1623_p3 = pneg %p1622_p0 }
  0x2a   : > { %1481 = dma.hbm_to_vmem [thread:$0]  (!%p1895_p12), %s2315_s2, 512, %s193_s28, [#allocation8], %s1800_s8, %s1800_s8, %s1801_s9  }
  0x2b   : > { %p1630_p8 = pnand %p1629_p11, %p1623_p3 }
  0x2d   : > { %1633 = shalt.err (!%p1630_p8)
}
  0x2e   : > { %1484 = dma.hbm_to_vmem [thread:$0]  (!%p1895_p12), %s2303_s3, 512, %s206_s6, [#allocation11], %s1800_s8, %s1800_s8, %s1801_s9  }
  0x2f   : > { %s1918_s15 = sadd.s32 1, %s1796_s21   ;;  %s36_s16 = sadd.s32 1, %s1792_s20 }
  0x30   : > { %s33_s17 = ssub.s32 %s1796_s21, %s1918_s15  ;;  %p43_p1 = scmp.ne.s32.totalorder %s1792_s20, %s1788_s19 }
  0x31   : > { %p34_p2 = scmp.eq.s32.totalorder %s33_s17, 0  ;;  %p44_p6 = scmp.eq.s32.totalorder %s1796_s21, 0 }
  0x32   : > { %p2316_p13 = scmp.eq.s32.totalorder %s1866_s22, 1  ;;  %p1501_p7 = scmp.lt.s32.totalorder %s1796_s21, 2 }
  0x33   : > { %s1934_s27 = scalar_select %p34_p2, %s1792_s20, %s36_s16  }
  0x34   : > { %p1928_p5 = por %p2316_p13, %p43_p1  ;;  %p45_p10 = por %p44_p6, %p43_p1 }
  0x35   : > { %s219_s28 = sand.u32 1, %s1792_s20   ;;  %s1330_s30 = sshll.u32 %s1796_s21, 7 }
  0x36   : > { %s2317_s23 = scalar_select %p1928_p5, 1, 0 }
  0x37   : > { %s1937_s29 = sshll.u32 %s219_s28, 3  ;;  %s2318_s0 = sld [smem:[#allocation21_spill]] }
  0x38   : > { %s223_s9 = scalar_lea.vmem [#allocation4], %s1937_s29  ;;  %p1950_p12 = pnand %p1501_p7, %p45_p10 }
  0x39   : > { %s230_s10 = sshll.u32 %s223_s9, 4  ;;  %s1954_s12 = scalar_lea.sflag [#allocation5], %s219_s28  ;;  %s1948_s10 = int_to_ptr.vmem [resolvable:$true] %s230_s10 }
  0x3a   : > { %p1636_p3 = pneg %p1950_p12 }
  0x3d   : > { %s1945_s8 = scalar_lea.hbm %s2318_s0, %s1330_s30  ;;  %s1639_s17 = scalar_lea.hbm %s2318_s0, 256 }
  0x3e   : > { %s1634_s13 = scalar_lea.hbm %s1945_s8, 128  ;;  %p1640_p1 = scmp.lt.s32.totalorder %s1945_s8, %s2318_s0 }
  0x3f   : > { %p1635_p0 = scmp.ne.s32.totalorder %s1945_s8, %s1634_s13  ;;  %p1641_p2 = scmp.lt.s32.totalorder %s1639_s17, %s1634_s13 }
  0x41   : > { %p1637_p11 = pnand %p1636_p3, %p1635_p0  ;;  %p1642_p6 = por %p1641_p2, %p1640_p1 }
  0x43   : > { %p1638_p8 = pneg %p1637_p11 }
  0x45   : > { %p1643_p13 = pnand %p1642_p6, %p1638_p8 }
  0x47   : > { %1646 = shalt.err (!%p1643_p13)
}
  0x48   : > { %s1647_s28 = scalar_lea.vmem %s1948_s10, 128  ;;  %s1802_s9 = smov [#allocation4]  }
  0x49   : > { %p1648_p7 = scmp.ne.s32.totalorder %s1948_s10, %s1647_s28  ;;  %s1652_s14 = sshll.u32 %s1802_s9, 4  ;;  %s1653_s14 = int_to_ptr.vmem [resolvable:$false] %s1652_s14 }
  0x4a   : > { %s1654_s16 = scalar_lea.vmem %s1653_s14, 256  ;;  %p1655_p11 = scmp.lt.s32.totalorder %s1948_s10, %s1653_s14 }
  0x4b   : > { %p1650_p10 = pnand %p1648_p7, %p1636_p3  ;;  %p1656_p5 = scmp.lt.s32.totalorder %s1654_s16, %s1647_s28 }
  0x4d   : > { %p1651_p0 = pneg %p1650_p10  ;;  %p1657_p4 = por %p1656_p5, %p1655_p11 }
  0x4f   : > { %p1658_p1 = pnand %p1657_p4, %p1651_p0 }
  0x51   : > { %1661 = shalt.err (!%p1658_p1)
}
  0x52   : > { %s1803_s13 = smov 32   ;;  %s1804_s17 = smov 2  }
  0x53   : > { %1488 = dma.hbm_to_vmem [thread:$0]  (!%p1950_p12), %s1945_s8, 128, %s1948_s10, %s1954_s12, %s1803_s13, %s1803_s13, %s1804_s17  }
  0x54   : > { %s1989_s28 = scalar_lea.hbm %s2301_s1, %s1330_s30  ;;  %s244_s9 = scalar_lea.vmem [#allocation7], %s1937_s29 }
  0x55   : > { %s251_s14 = sshll.u32 %s244_s9, 4  ;;  %s240_s16 = sand.u32 1, %s1796_s21   ;;  %s1992_s14 = int_to_ptr.vmem [resolvable:$true] %s251_s14 }
  0x56   : > { %s241_s0 = scalar_lea.sflag [#allocation8], %s240_s16  ;;  %s1662_s2 = scalar_lea.hbm %s1989_s28, 128 }
  0x57   : > { %p1663_p4 = scmp.ne.s32.totalorder %s1989_s28, %s1662_s2  ;;  %s1667_s30 = scalar_lea.hbm %s2301_s1, 256 }
  0x58   : > { %p1668_p2 = scmp.lt.s32.totalorder %s1989_s28, %s2301_s1  ;;  %p1669_p6 = scmp.lt.s32.totalorder %s1667_s30, %s1662_s2 }
  0x59   : > { %p1665_p5 = pnand %p1663_p4, %p1636_p3 }
  0x5a   : > { %p1670_p13 = por %p1669_p6, %p1668_p2 }
  0x5b   : > { %p1666_p8 = pneg %p1665_p5 }
  0x5d   : > { %p1671_p7 = pnand %p1670_p13, %p1666_p8 }
  0x5f   : > { %1674 = shalt.err (!%p1671_p7)
}
  0x60   : > { %s1675_s29 = scalar_lea.vmem %s1992_s14, 128  ;;  %s1805_s7 = smov [#allocation7]  }
  0x61   : > { %p1676_p10 = scmp.ne.s32.totalorder %s1992_s14, %s1675_s29  ;;  %s1680_s9 = sshll.u32 %s1805_s7, 4  ;;  %s1681_s9 = int_to_ptr.vmem [resolvable:$false] %s1680_s9 }
  0x62   : > { %s1682_s16 = scalar_lea.vmem %s1681_s9, 256  ;;  %p1683_p1 = scmp.lt.s32.totalorder %s1992_s14, %s1681_s9 }
  0x63   : > { %p1678_p0 = pnand %p1676_p10, %p1636_p3  ;;  %p1684_p4 = scmp.lt.s32.totalorder %s1682_s16, %s1675_s29 }
  0x65   : > { %p1679_p11 = pneg %p1678_p0  ;;  %p1685_p5 = por %p1684_p4, %p1683_p1 }
  0x67   : > { %p1686_p2 = pnand %p1685_p5, %p1679_p11 }
  0x69   : > { %1689 = shalt.err (!%p1686_p2)
}
  0x6a   : > { %1491 = dma.hbm_to_vmem [thread:$0]  (!%p1950_p12), %s1989_s28, 128, %s1992_s14, %s241_s0, %s1803_s13, %s1803_s13, %s1804_s17  }
  0x6b   : > { %263 = sbr.rel (%p1886_p9) target bundleno = 3690 (0xe6a), region = 36  ;;  %s2023_s2 = sand.u32 (!%p1886_p9), 1, %s1788_s19  }
  0x6c   : > { %s1291_s8 = sshll.u32 (!%p1886_p9), %s2023_s2, 3  ;;  %s266_s10 = scalar_lea.sflag (!%p1886_p9), [#allocation5], %s2023_s2 }
  0x6d   : > { %s2027_s30 = scalar_lea.vmem (!%p1886_p9), [#allocation4], %s1291_s8  ;;  %p2320_p3 = scmp.ne.s32.totalorder (!%p1886_p9), %s2311_s24, 0 }
  0x70   : > { %1759 = dma.done.wait (%p2320_p3), %s266_s10, 128  }
  0x71   : > { %1761 = vsyncadd (%p2320_p3), %s266_s10, 4294967168  ;;  %s274_s0 = sand.u32 1, %s1866_s22   ;;  %s2034_s11 = scalar_lea.vmem [#allocation7], %s1291_s8 }
  0x72   : > { %s275_s26 = scalar_lea.sflag [#allocation8], %s274_s0 }
  0x73   : > { %1763 = dma.done.wait (%p2320_p3), %s275_s26, 128  }
  0x74   : > { %1765 = vsyncadd (%p2320_p3), %s275_s26, 4294967168  ;;  %p2321_p9 = scmp.eq.s32.totalorder %s1866_s22, 0 }
  0x76   : > { %1767 = dma.done.wait (%p2321_p9), [#allocation8], 512   ;;  %p2322_p12 = pmov %p2321_p9 }
  0x77   : > { %p2323_p8 = pmov %p2321_p9 }
  0x78   : > { %1769 = vsyncadd (%p2322_p12), [#allocation8], 4294966784 }
  0x79   : > { %1771 = dma.done.wait (%p2323_p8), [#allocation11], 512   ;;  %p2324_p6 = pmov %p2323_p8 }
  0x7a   : > { %s2048_s13 = scalar_lea.vmem [#allocation12], %s1291_s8  ;;  %s2050_s17 = scalar_lea.vmem [#allocation13], %s1291_s8 }
  0x7b   : > { %1773 = vsyncadd (%p2324_p6), [#allocation11], 4294966784  ;;  %p2325_p13 = scmp.ne.s32.totalorder %s1866_s22, 0 }
  0x7d   : > { %330 = sbr.rel (%p2325_p13) target bundleno = 132 (0x84), region = 56 }
  0x82   : > { %vm331_vm0 = vcmask 254976   ;;  %v1806_v0 = vmov 0.0  }
  0x83   : > { %332 = vst.msk [vmem:[#allocation2] sm:$0x3] %vm331_vm0, %v1806_v0  ;;  %333 = vst.msk [vmem:[#allocation3] sm:$0x3] %vm331_vm0, %v1806_v0 }
  0x84 PF: > { %v2054_v1 = vld [vmem:[#allocation9 + $0x18] sm:$0xff]  ;;  %v1807_v2 = vmov 0.0   ;;  %v2057_v3 = vld [vmem:[#allocation9 + $0x10] sm:$0xff]  ;;  %vm1808_vm1 = vmmov 0   ;;  %v2068_v6 = vld [vmem:[#allocation9 + $0x8] sm:$0xff]  ;;  %vm345_vm2 = vcmask 261120  }
  0x85   : > { %1374 = vmatprep.subr.mxu0 %v1807_v2  ;;  %1382 = vmatprep.mubr.msk.f32.mxu0 %vm1808_vm1, %v1807_v2  ;;  %v2061_v4 = vld [vmem:[#allocation10 + $0x18] sm:$0xff]  ;;  %v2065_v5 = vld [vmem:[#allocation10 + $0x10] sm:$0xff]  ;;  %v2074_v7 = vld [vmem:[#allocation9] sm:$0xff]  ;;  %s1809_s24 = smov 64   ;;  %s1810_s28 = smov 32   ;;  %vm527_vm3 = vcmask 254976  }
  0x86   : > { %1375 = vmatpush3.msra.mxu0 %v2054_v1  ;;  %1385 = vmatprep.subr.mxu1 %v1807_v2  ;;  %v2095_v9 = vld [vmem:[#allocation10 + $0x8] sm:$0xff]  ;;  %v2099_v10 = vld [vmem:[#allocation10] sm:$0xff]  ;;  %v344_v11 = vld [vmem:[%s2034_s11] sm:$0x3]  ;;  %s1811_s14 = smov 96   ;;  %s1332_s12 = sshll.u32 %s1866_s22, 7 }
  0x87   : > { %1376 = vmatprep.subr.mxu0 %v1807_v2  ;;  %1386 = vmatpush3.msra.mxu1 %v2061_v4  ;;  %v420_v15 = vld [vmem:[%s2027_s30] sm:$0x3]  ;;  %v1301_v35 = vld [vmem:[%s2034_s11 + $0x2] sm:$0x3]  ;;  %v1303_v39 = vld [vmem:[%s2027_s30 + $0x2] sm:$0x3]  ;;  %s2213_s9 = scalar_lea.hbm %s2305_s5, %s1332_s12 }
  0x88   : > { %1377 = vmatpush3.msra.mxu0 %v2057_v3  ;;  %1387 = vmatprep.subr.mxu1 %v1807_v2  ;;  %v1308_v57 = vld [vmem:[%s2034_s11 + $0x4] sm:$0x3]  ;;  %v1310_v61 = vld [vmem:[%s2027_s30 + $0x4] sm:$0x3]  ;;  %s1132_s6 = sshll.u32 %s2050_s17, 4  ;;  %s1103_s16 = scalar_lea.sflag [#allocation14], %s2023_s2  ;;  %s2215_s6 = int_to_ptr.vmem [resolvable:$true] %s1132_s6 }
  0x89   : > { %1378 = vmatprep.subr.mxu0 %v1807_v2  ;;  %1388 = vmatpush3.msra.mxu1 %v2065_v5  ;;  %s1690_s8 = scalar_lea.vmem %s2215_s6, 128  ;;  %p2326_p10 = scmp.ne.s32.totalorder %s2317_s23, 0 }
  0x8a   : > { %1379 = vmatpush3.msra.mxu0 %v2068_v6  ;;  %v342_v8 = vld [vmem:[#allocation2] sm:$0x3]  ;;  %1389 = vmatprep.subr.mxu1 %v1807_v2  ;;  %v343_v20 = vld [vmem:[#allocation3] sm:$0x3]  ;;  %p1691_p7 = scmp.ne.s32.totalorder %s2215_s6, %s1690_s8  ;;  %s1812_s10 = smov [#allocation13]  }
  0x8b   : > { %1380 = vmatprep.subr.mxu0 %v1807_v2  ;;  %1393 = vmatprep.mubr.msk.f32.mxu1 %vm1808_vm1, %v1807_v2 }
  0x8c   : > { %1381 = vmatpush3.msra.mxu0 %v2074_v7  ;;  %1390 = vmatpush3.msra.mxu1 %v2095_v9  ;;  %p1692_p0 = pnand %p1691_p7, %p2326_p10 }
  0x8d   : > { %1383 = vmatmul.mubr.msk.f32.vlgmr.msra.gmra.mxu0 %vm345_vm2, %v342_v8  ;;  %1396 = vmatprep.subr.mxu0 %v1807_v2 }
  0x8e   : > { %1397 = vmatpush3.msra.mxu0 %v2054_v1  ;;  %1404 = vmatprep.mubr.msk.f32.mxu0 %vm1808_vm1, %v1807_v2  ;;  %p1693_p11 = pneg %p1692_p0 }
  0x8f   : > { %1398 = vmatprep.subr.mxu0 %v1807_v2  ;;  %1391 = vmatprep.subr.mxu1 %v1807_v2 }
  0x90   : > { %1399 = vmatpush3.msra.mxu0 %v2057_v3  ;;  %1392 = vmatpush3.msra.mxu1 %v2099_v10 }
  0x91   : > { %1400 = vmatprep.subr.mxu0 %v1807_v2  ;;  %1407 = vmatprep.subr.mxu1 %v1807_v2 }
  0x92   : > { %1401 = vmatpush3.msra.mxu0 %v2068_v6 }
  0x93   : > { %1402 = vmatprep.subr.mxu0 %v1807_v2 }
  0x94   : > { %1403 = vmatpush3.msra.mxu0 %v2074_v7 }
  0x95   : > { %1418 = vmatprep.subr.mxu0 %v1807_v2 }
 0x14d   : > { %v415_v12 = vpop.f32.mrf.mxu0 }
 0x14e   : > { %v419_v13 = vadd.f32 %v415_v12, %v344_v11 }
 0x14f   : > { %v1384_v14 = vpop.f32.mrf.mxu0 }
 0x150   : > { %1394 = vmatmul.mubr.msk.f32.vlgmr.msra.gmra.mxu1 %vm345_vm2, %v419_v13 }
 0x151   : > { %1408 = vmatpush3.msra.mxu1 %v2061_v4  ;;  %1415 = vmatprep.mubr.msk.f32.mxu1 %vm1808_vm1, %v1807_v2 }
 0x152   : > { %1409 = vmatprep.subr.mxu1 %v1807_v2 }
 0x153   : > { %1410 = vmatpush3.msra.mxu1 %v2065_v5 }
 0x154   : > { %1411 = vmatprep.subr.mxu1 %v1807_v2 }
 0x155   : > { %1412 = vmatpush3.msra.mxu1 %v2095_v9 }
 0x156   : > { %1413 = vmatprep.subr.mxu1 %v1807_v2 }
 0x157   : > { %1414 = vmatpush3.msra.mxu1 %v2099_v10 }
 0x158   : > { %1429 = vmatprep.subr.mxu1 %v1807_v2 }
 0x210   : > { %v490_v16 = vpop.f32.mrf.mxu1 }
 0x211   : > { %v494_v17 = vadd.f32 %v490_v16, %v420_v15  ;;  %v1315_v15 = vld [vmem:[%s2034_s11 + $0x6] sm:$0x3] }
 0x212   : > { %v1395_v18 = vpop.f32.mrf.mxu1 }
 0x213   : > { %1550 = vtanh.f32 %v494_v17  ;;  %v1300_v21 = vmul.f32 -1.442695, %v494_v17 }
 0x215   : > { %1552 = vpow2.f32 %v1300_v21 }
 0x220   : > { %v1551_v19 = vpop.eup %1550 }
 0x221   : > { %508 = vrot.lane.b32.xlu0 %v1551_v19, %s1809_s24  ;;  %v1317_v19 = vld [vmem:[%s2027_s30 + $0x6] sm:$0x3]  ;;  %s1694_s30 = sshll.u32 %s1812_s10, 4  ;;  %s1695_s30 = int_to_ptr.vmem [resolvable:$false] %s1694_s30 }
 0x222   : > { %v1553_v22 = vpop.eup %1552  ;;  %s1696_s0 = scalar_lea.vmem %s1695_s30, 256  ;;  %p1697_p1 = scmp.lt.s32.totalorder %s2215_s6, %s1695_s30 }
 0x223   : > { %v498_v23 = vadd.f32 1.0, %v1553_v22  ;;  %p1698_p4 = scmp.lt.s32.totalorder %s1696_s0, %s1690_s8 }
 0x225   : > { %503 = vrot.lane.b32.xlu0 %v343_v20, %s1810_s28  ;;  %1554 = vrcp.f32 %v498_v23  ;;  %p1699_p5 = por %p1698_p4, %p1697_p1 }
 0x227   : > { %p1700_p2 = pnand %p1699_p5, %p1693_p11 }
 0x232   : > { %v1555_v24 = vpop.eup %1554 }
 0x293   : > { %v509_v25 = vpop.permute.xlu0 %508 }
 0x294   : > { %v511_v26 = vmul.f32 %v1555_v24, %v509_v25 }
 0x296   : > { %513 = vrot.lane.b32.xlu1 %v511_v26, %s1810_s28 }
 0x297   : > { %v504_v27 = vpop.permute.xlu0 %503 }
 0x298   : > { %v506_v28 = vmul.f32 %v1555_v24, %v504_v27 }
 0x308   : > { %v514_v29 = vpop.permute.xlu1 %513 }
 0x309   : > { %v2119_v30 = vadd.f32 %v514_v29, %v506_v28 }
 0x30b   : > { %1556 = vtanh.f32 %v2119_v30 }
 0x318   : > { %v1557_v31 = vpop.eup %1556 }
 0x319   : > { %519 = vrot.lane.b32.xlu1 %v1557_v31, %s1809_s24 }
 0x38b   : > { %v520_v32 = vpop.permute.xlu1 %519 }
 0x38c   : > { %v522_v33 = vmul.f32 %v1555_v24, %v520_v32 }
 0x38e   : > { %524 = vrot.lane.b32.xlu0 %v522_v33, %s1810_s28 }
 0x400   : > { %v525_v34 = vpop.permute.xlu0 %524 }
 0x401   : > { %528 = vst.msk [vmem:[%s2048_s13] sm:$0x3] %vm527_vm3, %v525_v34  ;;  %1405 = vmatmul.mubr.msk.f32.vlgmr.msra.gmra.mxu0 %vm345_vm2, %v525_v34 }
 0x402   : > { %1419 = vmatpush3.msra.mxu0 %v2054_v1  ;;  %1426 = vmatprep.mubr.msk.f32.mxu0 %vm1808_vm1, %v1807_v2 }
 0x403   : > { %1420 = vmatprep.subr.mxu0 %v1807_v2 }
 0x404   : > { %1421 = vmatpush3.msra.mxu0 %v2057_v3 }
 0x405   : > { %1422 = vmatprep.subr.mxu0 %v1807_v2 }
 0x406   : > { %1423 = vmatpush3.msra.mxu0 %v2068_v6 }
 0x407   : > { %1424 = vmatprep.subr.mxu0 %v1807_v2 }
 0x408   : > { %1425 = vmatpush3.msra.mxu0 %v2074_v7 }
 0x409   : > { %1440 = vmatprep.subr.mxu0 %v1807_v2 }
 0x4c1   : > { %v604_v36 = vpop.f32.mrf.mxu0 }
 0x4c2   : > { %v608_v37 = vadd.f32 %v1301_v35, %v604_v36 }
 0x4c3   : > { %v1406_v38 = vpop.f32.mrf.mxu0 }
 0x4c4   : > { %1416 = vmatmul.mubr.msk.f32.vlgmr.msra.gmra.mxu1 %vm345_vm2, %v608_v37 }
 0x4c5   : > { %1430 = vmatpush3.msra.mxu1 %v2061_v4  ;;  %1437 = vmatprep.mubr.msk.f32.mxu1 %vm1808_vm1, %v1807_v2 }
 0x4c6   : > { %1431 = vmatprep.subr.mxu1 %v1807_v2 }
 0x4c7   : > { %1432 = vmatpush3.msra.mxu1 %v2065_v5 }
 0x4c8   : > { %1433 = vmatprep.subr.mxu1 %v1807_v2 }
 0x4c9   : > { %1434 = vmatpush3.msra.mxu1 %v2095_v9 }
 0x4ca   : > { %1435 = vmatprep.subr.mxu1 %v1807_v2 }
 0x4cb   : > { %1436 = vmatpush3.msra.mxu1 %v2099_v10 }
 0x4cc   : > { %1451 = vmatprep.subr.mxu1 %v1807_v2 }
 0x584   : > { %v680_v40 = vpop.f32.mrf.mxu1 }
 0x585   : > { %v684_v41 = vadd.f32 %v1303_v39, %v680_v40 }
 0x586   : > { %v1417_v42 = vpop.f32.mrf.mxu1 }
 0x587   : > { %1558 = vtanh.f32 %v684_v41  ;;  %v1305_v44 = vmul.f32 -1.442695, %v684_v41 }
 0x589   : > { %1560 = vpow2.f32 %v1305_v44 }
 0x594   : > { %v1559_v43 = vpop.eup %1558 }
 0x595   : > { %694 = vrot.lane.b32.xlu1 %v1559_v43, %s1809_s24 }
 0x596   : > { %v1561_v45 = vpop.eup %1560 }
 0x597   : > { %v688_v46 = vadd.f32 1.0, %v1561_v45 }
 0x599   : > { %1562 = vrcp.f32 %v688_v46 }
 0x5a6   : > { %v1563_v47 = vpop.eup %1562 }
 0x5a7   : > { %v692_v50 = vmul.f32 %v1563_v47, %v2119_v30 }
 0x607   : > { %v695_v48 = vpop.permute.xlu1 %694 }
 0x608   : > { %v697_v49 = vmul.f32 %v1563_v47, %v695_v48 }
 0x60a   : > { %699 = vrot.lane.b32.xlu0 %v697_v49, %s1810_s28 }
 0x67c   : > { %v700_v51 = vpop.permute.xlu0 %699 }
 0x67d   : > { %v2153_v52 = vadd.f32 %v700_v51, %v692_v50 }
 0x67f   : > { %1564 = vtanh.f32 %v2153_v52 }
 0x68c   : > { %v1565_v53 = vpop.eup %1564 }
 0x68d   : > { %705 = vrot.lane.b32.xlu1 %v1565_v53, %s1809_s24 }
 0x6ff   : > { %v706_v54 = vpop.permute.xlu1 %705 }
 0x700   : > { %v708_v55 = vmul.f32 %v1563_v47, %v706_v54 }
 0x702   : > { %710 = vrot.lane.b32.xlu0 %v708_v55, %s1810_s28 }
 0x774   : > { %v711_v56 = vpop.permute.xlu0 %710 }
 0x775   : > { %1306 = vst.msk [vmem:[%s2048_s13 + $0x2] sm:$0x3] %vm527_vm3, %v711_v56  ;;  %1427 = vmatmul.mubr.msk.f32.vlgmr.msra.gmra.mxu0 %vm345_vm2, %v711_v56 }
 0x776   : > { %1441 = vmatpush3.msra.mxu0 %v2054_v1  ;;  %1448 = vmatprep.mubr.msk.f32.mxu0 %vm1808_vm1, %v1807_v2 }
 0x777   : > { %1442 = vmatprep.subr.mxu0 %v1807_v2 }
 0x778   : > { %1443 = vmatpush3.msra.mxu0 %v2057_v3 }
 0x779   : > { %1444 = vmatprep.subr.mxu0 %v1807_v2 }
 0x77a   : > { %1445 = vmatpush3.msra.mxu0 %v2068_v6 }
 0x77b   : > { %1446 = vmatprep.subr.mxu0 %v1807_v2 }
 0x77c   : > { %1447 = vmatpush3.msra.mxu0 %v2074_v7 }
 0x835   : > { %v791_v58 = vpop.f32.mrf.mxu0 }
 0x836   : > { %v795_v59 = vadd.f32 %v1308_v57, %v791_v58 }
 0x837   : > { %v1428_v60 = vpop.f32.mrf.mxu0 }
 0x838   : > { %1438 = vmatmul.mubr.msk.f32.vlgmr.msra.gmra.mxu1 %vm345_vm2, %v795_v59 }
 0x839   : > { %1452 = vmatpush3.msra.mxu1 %v2061_v4  ;;  %1459 = vmatprep.mubr.msk.f32.mxu1 %vm1808_vm1, %v1807_v2 }
 0x83a   : > { %1453 = vmatprep.subr.mxu1 %v1807_v2 }
 0x83b   : > { %1454 = vmatpush3.msra.mxu1 %v2065_v5 }
 0x83c   : > { %1455 = vmatprep.subr.mxu1 %v1807_v2 }
 0x83d   : > { %1456 = vmatpush3.msra.mxu1 %v2095_v9 }
 0x83e   : > { %1457 = vmatprep.subr.mxu1 %v1807_v2 }
 0x83f   : > { %1458 = vmatpush3.msra.mxu1 %v2099_v10 }
 0x8f8   : > { %v867_v62 = vpop.f32.mrf.mxu1 }
 0x8f9   : > { %v871_v63 = vadd.f32 %v1310_v61, %v867_v62 }
 0x8fa   : > { %v1439_v0 = vpop.f32.mrf.mxu1 }
 0x8fb   : > { %1566 = vtanh.f32 %v871_v63  ;;  %v1312_v3 = vmul.f32 -1.442695, %v871_v63 }
 0x8fd   : > { %1568 = vpow2.f32 %v1312_v3 }
 0x908   : > { %v1567_v1 = vpop.eup %1566 }
 0x909   : > { %881 = vrot.lane.b32.xlu1 %v1567_v1, %s1809_s24 }
 0x90a   : > { %v1569_v4 = vpop.eup %1568 }
 0x90b   : > { %v875_v5 = vadd.f32 1.0, %v1569_v4 }
 0x90d   : > { %1570 = vrcp.f32 %v875_v5 }
 0x91a   : > { %v1571_v6 = vpop.eup %1570 }
 0x91b   : > { %v879_v8 = vmul.f32 %v1571_v6, %v2153_v52 }
 0x97b   : > { %v882_v7 = vpop.permute.xlu1 %881 }
 0x97c   : > { %v884_v2 = vmul.f32 %v1571_v6, %v882_v7 }
 0x97e   : > { %886 = vrot.lane.b32.xlu0 %v884_v2, %s1810_s28 }
 0x9f0   : > { %v887_v9 = vpop.permute.xlu0 %886 }
 0x9f1   : > { %v889_v10 = vadd.f32 %v887_v9, %v879_v8 }
 0x9f3   : > { %1572 = vtanh.f32 %v889_v10 }
 0xa00   : > { %v1573_v11 = vpop.eup %1572 }
 0xa01   : > { %892 = vrot.lane.b32.xlu1 %v1573_v11, %s1809_s24 }
 0xa73   : > { %v893_v12 = vpop.permute.xlu1 %892 }
 0xa74   : > { %v895_v13 = vmul.f32 %v1571_v6, %v893_v12 }
 0xa76   : > { %897 = vrot.lane.b32.xlu0 %v895_v13, %s1810_s28 }
 0xae8   : > { %v898_v14 = vpop.permute.xlu0 %897 }
 0xae9   : > { %1313 = vst.msk [vmem:[%s2048_s13 + $0x4] sm:$0x3] %vm527_vm3, %v898_v14  ;;  %1449 = vmatmul.mubr.msk.f32.vlgmr.msra.gmra.mxu0 %vm345_vm2, %v898_v14 }
 0xba9   : > { %v978_v16 = vpop.f32.mrf.mxu0 }
 0xbaa   : > { %v982_v17 = vadd.f32 %v1315_v15, %v978_v16 }
 0xbab   : > { %v1450_v18 = vpop.f32.mrf.mxu0 }
 0xbac   : > { %1460 = vmatmul.mubr.msk.f32.vlgmr.msra.gmra.mxu1 %vm345_vm2, %v982_v17 }
 0xc6c   : > { %v1054_v20 = vpop.f32.mrf.mxu1 }
 0xc6d   : > { %v1058_v21 = vadd.f32 %v1317_v19, %v1054_v20 }
 0xc6e   : > { %v1461_v22 = vpop.f32.mrf.mxu1 }
 0xc6f   : > { %1574 = vtanh.f32 %v1058_v21  ;;  %v1319_v24 = vmul.f32 -1.442695, %v1058_v21 }
 0xc71   : > { %1576 = vpow2.f32 %v1319_v24 }
 0xc7c   : > { %v1575_v23 = vpop.eup %1574 }
 0xc7d   : > { %1068 = vrot.lane.b32.xlu1 %v1575_v23, %s1809_s24 }
 0xc7e   : > { %v1577_v25 = vpop.eup %1576 }
 0xc7f   : > { %v1062_v26 = vadd.f32 1.0, %v1577_v25 }
 0xc81   : > { %1578 = vrcp.f32 %v1062_v26 }
 0xc8e   : > { %v1579_v27 = vpop.eup %1578 }
 0xc8f   : > { %v1066_v31 = vmul.f32 %v1579_v27, %v889_v10 }
 0xcef   : > { %v1069_v28 = vpop.permute.xlu1 %1068 }
 0xcf0   : > { %v1071_v29 = vmul.f32 %v1579_v27, %v1069_v28 }
 0xcf2   : > { %1073 = vrot.lane.b32.xlu0 %v1071_v29, %s1810_s28 }
 0xcf6   : > { %530 = vrot.lane.b32.xlu0 %v2119_v30, %s1811_s14 }
 0xcfa   : > { %903 = vrot.lane.b32.xlu0 %v889_v10, %s1811_s14 }
 0xd64   : > { %v1074_v32 = vpop.permute.xlu0 %1073 }
 0xd65   : > { %v1076_v33 = vadd.f32 %v1074_v32, %v1066_v31 }
 0xd67   : > { %1580 = vtanh.f32 %v1076_v33  ;;  %1090 = vrot.lane.b32.xlu0 %v1076_v33, %s1811_s14 }
 0xd68   : > { %v531_v34 = vpop.permute.xlu0 %530 }
 0xd69   : > { %533 = vst.msk [vmem:[%s2050_s17] sm:$0x3] %vm527_vm3, %v531_v34 }
 0xd6c   : > { %v904_v35 = vpop.permute.xlu0 %903 }
 0xd6d   : > { %1314 = vst.msk [vmem:[%s2050_s17 + $0x4] sm:$0x3] %vm527_vm3, %v904_v35 }
 0xd74   : > { %v1581_v36 = vpop.eup %1580 }
 0xd75   : > { %1079 = vrot.lane.b32.xlu1 %v1581_v36, %s1809_s24 }
 0xd79   : > { %716 = vrot.lane.b32.xlu1 %v2153_v52, %s1811_s14 }
 0xdd9   : > { %v1091_v30 = vpop.permute.xlu0 %1090 }
 0xdda   : > { %1321 = vst.msk [vmem:[%s2050_s17 + $0x6] sm:$0x3] %vm527_vm3, %v1091_v30  ;;  %1096 = vst.msk [vmem:[#allocation3] sm:$0x3] %vm527_vm3, %v1091_v30 }
 0xde7   : > { %v1080_v37 = vpop.permute.xlu1 %1079 }
 0xde8   : > { %v1082_v38 = vmul.f32 %v1579_v27, %v1080_v37 }
 0xdea   : > { %1084 = vrot.lane.b32.xlu1 %v1082_v38, %s1810_s28 }
 0xdeb   : > { %v717_v39 = vpop.permute.xlu1 %716 }
 0xdec   : > { %1307 = vst.msk [vmem:[%s2050_s17 + $0x2] sm:$0x3] %vm527_vm3, %v717_v39 }
 0xded   : > { %1703 = shalt.err (!%p1700_p2)
}
 0xdee   : > { %s1704_s26 = scalar_lea.hbm %s2213_s9, 128  ;;  %s1708_s24 = scalar_lea.hbm %s2305_s5, 256 }
 0xdef   : > { %p1705_p3 = scmp.ne.s32.totalorder %s2213_s9, %s1704_s26  ;;  %p1709_p8 = scmp.lt.s32.totalorder %s2213_s9, %s2305_s5 }
 0xdf0   : > { %p1710_p6 = scmp.lt.s32.totalorder %s1708_s24, %s1704_s26 }
 0xdf1   : > { %p1706_p9 = pnand %p1705_p3, %p2326_p10 }
 0xdf2   : > { %p1711_p13 = por %p1710_p6, %p1709_p8 }
 0xdf3   : > { %p1707_p12 = pneg %p1706_p9 }
 0xdf5   : > { %p1712_p7 = pnand %p1711_p13, %p1707_p12 }
 0xdf7   : > { %1715 = shalt.err (!%p1712_p7)
}
 0xdf8   : > { %s1813_s7 = smov 2   ;;  %s1116_s8 = sshll.u32 %s2048_s13, 4  ;;  %s2253_s8 = int_to_ptr.vmem [resolvable:$true] %s1116_s8 }
 0xdf9   : > { %1475 = dma.vmem_to_hbm [thread:$0]  (%p2326_p10), %s2215_s6, 128, %s2213_s9, %s1103_s16, %s1810_s28, %s1810_s28, %s1813_s7  }
 0xdfa   : > { %s2251_s0 = scalar_lea.hbm %s2304_s4, %s1332_s12  ;;  %s1098_s26 = scalar_lea.sflag [#allocation6], %s2023_s2 }
 0xdfb   : > { %s1716_s11 = scalar_lea.vmem %s2253_s8, 128  ;;  %s1814_s22 = smov [#allocation12]  }
 0xdfc   : > { %p1717_p0 = scmp.ne.s32.totalorder %s2253_s8, %s1716_s11  ;;  %s1720_s6 = sshll.u32 %s1814_s22, 4  ;;  %s1721_s6 = int_to_ptr.vmem [resolvable:$false] %s1720_s6 }
 0xdfd   : > { %s1722_s12 = scalar_lea.vmem %s1721_s6, 256  ;;  %p1723_p4 = scmp.lt.s32.totalorder %s2253_s8, %s1721_s6 }
 0xdfe   : > { %p1718_p11 = pnand %p1717_p0, %p2326_p10  ;;  %p1724_p5 = scmp.lt.s32.totalorder %s1722_s12, %s1716_s11 }
 0xe00   : > { %p1719_p1 = pneg %p1718_p11  ;;  %p1725_p2 = por %p1724_p5, %p1723_p4 }
 0xe02   : > { %p1726_p3 = pnand %p1725_p2, %p1719_p1 }
 0xe5c   : > { %v1085_v40 = vpop.permute.xlu1 %1084 }
 0xe5d   : > { %1320 = vst.msk [vmem:[%s2048_s13 + $0x6] sm:$0x3] %vm527_vm3, %v1085_v40  ;;  %1095 = vst.msk [vmem:[#allocation2] sm:$0x3] %vm527_vm3, %v1085_v40 }
 0xe5e   : > { %1729 = shalt.err (!%p1726_p3)
}
 0xe5f   : > { %s1730_s13 = scalar_lea.hbm %s2251_s0, 128  ;;  %s1734_s16 = scalar_lea.hbm %s2304_s4, 256 }
 0xe60   : > { %p1731_p9 = scmp.ne.s32.totalorder %s2251_s0, %s1730_s13  ;;  %p1735_p6 = scmp.lt.s32.totalorder %s2251_s0, %s2304_s4 }
 0xe61   : > { %p1736_p13 = scmp.lt.s32.totalorder %s1734_s16, %s1730_s13 }
 0xe62   : > { %p1732_p12 = pnand %p1731_p9, %p2326_p10 }
 0xe63   : > { %p1737_p7 = por %p1736_p13, %p1735_p6 }
 0xe64   : > { %p1733_p8 = pneg %p1732_p12 }
 0xe66   : > { %p1738_p0 = pnand %p1737_p7, %p1733_p8 }
 0xe68   : > { %1741 = shalt.err (!%p1738_p0)
}
 0xe69   : > { %1474 = dma.vmem_to_hbm [thread:$0]  (%p2326_p10), %s2253_s8, 128, %s2251_s0, %s1098_s26, %s1810_s28, %s1810_s28, %s1813_s7  }
 0xe6a PF: > { %s1147_s14 = sand.u32 1, %s1784_s18   ;;  %p2327_p11 = scmp.ne.s32.totalorder %s2312_s25, 0 }
 0xe6b   : > { %p2328_p1 = scmp.ge.s32.totalorder %s1796_s21, 2  ;;  %s1148_s29 = scalar_lea.sflag [#allocation6], %s1147_s14 }
 0xe6d   : > { %p1493_p4 = pnand %p2328_p1, %p2327_p11 }
 0xe6f   : > { %p1494_p5 = pneg %p1493_p4 }
 0xe71   : > { %1775 = dma.done.wait (%p1494_p5), %s1148_s29, 128  }
 0xe72   : > { %1777 = vsyncadd (%p1494_p5), %s1148_s29, 4294967168  ;;  %s1157_s10 = scalar_lea.sflag [#allocation14], %s1147_s14 }
 0xe73   : > { %1779 = dma.done.wait (%p1494_p5), %s1157_s10, 128  }
 0xe74   : > { %1781 = vsyncadd (%p1494_p5), %s1157_s10, 4294967168  ;;  %p26_p10 = scmp.ge.s32.totalorder %s1918_s15, 4   ;;  %s2329_s18 = smov %s1788_s19 }
 0xe75   : > { %s2330_s19 = smov %s1792_s20  ;;  %s2331_s20 = smov %s1934_s27 }
 0xe76   : > { %s2332_s21 = smov %s1918_s15  ;;  %28 = sbr.rel (!%p26_p10) target bundleno = 13 (0xd), region = 135 }
 0xe7b   :  { %1162 = vsyncpa [#allocation5], 1 }
 0xe7c   :  { %1164 = vsyncpa [#allocation5 + $0x1], 1 }
 0xe7d   :  { %1165 = vsyncpa [#allocation8], 1 }
 0xe7e   :  { %1167 = vsyncpa [#allocation8 + $0x1], 1 }
 0xe7f   :  { %1168 = vsyncpa [#allocation11], 1 }
 0xe80   :  { %1169 = vsyncpa [#allocation6], 1 }
 0xe81   :  { %1171 = vsyncpa [#allocation6 + $0x1], 1 }
 0xe82   :  { %1172 = vsyncpa [#allocation14], 1 }
 0xe83   :  { %1174 = vsyncpa [#allocation14 + $0x1], 1 }

</bundles_post_ra>
